<compile_context>
chip_gen: v5e
topology: v5e:2x2
jax: 0.10.0
libtpu: 0.0.40
codegen_flags: <defaults>
</compile_context>

<pallas_src>
import numpy as np
import jax
import jax.numpy as jnp
from jax.experimental import pallas as pl
from jax.experimental.pallas import tpu as pltpu


def _round_up(x, m):
    return ((x + m - 1) // m) * m


def _scatter_diag2_kernel(x_ref, w_ref, b_ref, o_ref):
    # x_ref: (M_pad, K_pad)        packed rows, one per (batch, diag position)
    # w_ref: (K_pad, Nout_pad)     block-diagonal weight (zero off-diagonal blocks)
    # b_ref: (1, Nout_pad)         flattened per-diagonal bias
    # o_ref: (M_pad, Nout_pad)
    y = jnp.dot(x_ref[...], w_ref[...], preferred_element_type=jnp.float32)
    o_ref[...] = (y + b_ref[...]).astype(o_ref.dtype)


def scatter_diagonal2(inputs, weights, bias, H=9, W=9):
    """inputs: list of 17 arrays (N, len_d, C_in); weights (17, C_out, C_in); bias (17, C_out).
    Returns NCHW image (N, C_out, H, W) with
        out[:, :, i, j] = inputs[i+j][:, p, :] @ weights[i+j].T + bias[i+j],
    where p is the position of pixel (i, j) along its anti-diagonal."""
    D = H + W - 1
    assert weights.shape[0] == D and bias.shape[0] == D
    C_out, C_in = weights.shape[1], weights.shape[2]
    N = inputs[0].shape[0]
    Lmax = max(int(x.shape[1]) for x in inputs)
    M = N * Lmax

    # ---- static glue: pad ragged diagonals once and stack (no dynamic slices) ----
    x_stacked = jnp.stack(
        [
            jnp.pad(x.astype(jnp.float32), ((0, 0), (0, Lmax - int(x.shape[1])), (0, 0)))
            for x in inputs
        ],
        axis=0,
    )  # (D, N, Lmax, C_in)

    # Repack to (M, D*C_in): row m = n*Lmax + p, columns grouped per diagonal.
    x_flat = jnp.transpose(x_stacked, (1, 2, 0, 3)).reshape(M, D * C_in)

    # Block-diagonal weight: W_bd[d*C_in + k, d*C_out + o] = weights[d, o, k].
    w_t = jnp.transpose(weights, (0, 2, 1)).astype(jnp.float32)          # (D, C_in, C_out)
    eye = jnp.eye(D, dtype=jnp.float32)
    w_bd = (w_t[:, :, None, :] * eye[:, None, :, None]).reshape(D * C_in, D * C_out)
    b_flat = bias.astype(jnp.float32).reshape(1, D * C_out)

    # ---- lane/sublane-dense padding for the kernel ----
    M_pad = _round_up(M, 8)                 # sublane multiple
    K_pad = _round_up(D * C_in, 128)        # contraction dim -> full lane vreg
    Nout_pad = _round_up(D * C_out, 128)    # output dim -> unmasked stores

    x_p = jnp.pad(x_flat, ((0, M_pad - M), (0, K_pad - D * C_in)))
    w_p = jnp.pad(w_bd, ((0, K_pad - D * C_in), (0, Nout_pad - D * C_out)))
    b_p = jnp.pad(b_flat, ((0, 0), (0, Nout_pad - D * C_out)))

    # ---- hot path: single Pallas invocation, everything resident in VMEM ----
    y_p = pl.pallas_call(
        _scatter_diag2_kernel,
        out_shape=jax.ShapeDtypeStruct((M_pad, Nout_pad), jnp.float32),
        in_specs=[
            pl.BlockSpec(memory_space=pltpu.MemorySpace.VMEM),
            pl.BlockSpec(memory_space=pltpu.MemorySpace.VMEM),
            pl.BlockSpec(memory_space=pltpu.MemorySpace.VMEM),
        ],
        out_specs=pl.BlockSpec(memory_space=pltpu.MemorySpace.VMEM),
    )(x_p, w_p, b_p)

    # NOTE: rows of y_p beyond each diagonal's true length hold `bias[d]` (not 0),
    # since padded X rows are zero; they are never read by the gather below.
    y = y_p[:M, : D * C_out].reshape(N, Lmax, D, C_out)

    # ---- static glue: scatter per-diagonal results back onto the (H, W) grid ----
    ii, jj = np.meshgrid(np.arange(H), np.arange(W), indexing="ij")
    dd = ii + jj                                   # diagonal index per pixel (static)
    pp = ii - np.maximum(0, dd - (W - 1))          # position along that diagonal (static)
    out = y[:, pp, dd, :]                          # (N, H, W, C_out), constant-index gather
    out = jnp.transpose(out, (0, 3, 1, 2))         # NCHW: (N, C_out, H, W)
    return out


if __name__ == "__main__":
    key = jax.random.PRNGKey(0)
    H = W = 9
    D = H + W - 1                 # 17 diagonals -> matches weights.shape[0] == 17
    N, C_in, C_out = 2, 4, 8

    k_w, k_b, k_x = jax.random.split(key, 3)
    weights = jax.random.normal(k_w, (D, C_out, C_in), dtype=jnp.float32)
    bias = jax.random.normal(k_b, (D, C_out), dtype=jnp.float32)

    x_keys = jax.random.split(k_x, D)
    inputs = []
    for d in range(D):
        L = min(min(d, D - 1 - d) + 1, H)           # anti-diagonal length on 9x9
        inputs.append(jax.random.normal(x_keys[d], (N, L, C_in), dtype=jnp.float32))

    out = scatter_diagonal2(inputs, weights, bias, H, W)
    out = jax.block_until_ready(out)

    # pure-JAX reference check of the Pallas hot path + scatter
    ref = jnp.zeros((N, C_out, H, W), dtype=jnp.float32)
    for i in range(H):
        for j in range(W):
            d = i + j
            p = i - max(0, d - (W - 1))
            val = inputs[d][:, p, :] @ weights[d].T + bias[d]
            ref = ref.at[:, :, i, j].set(val)
    assert out.shape == (N, C_out, H, W)
    assert jnp.allclose(out, ref, atol=1e-4, rtol=1e-4)

    print("KERNEL_OK")
</pallas_src>

<mosaic_0001>
module attributes {stable_mosaic.version = 11 : i64} {
  func.func @_scatter_diag2_kernel(%arg0: memref<24x128xf32, #tpu.memory_space<vmem>>, %arg1: memref<128x256xf32, #tpu.memory_space<vmem>>, %arg2: memref<1x256xf32, #tpu.memory_space<vmem>>, %arg3: memref<24x256xf32, #tpu.memory_space<vmem>>) attributes {dimension_semantics = [], scalar_prefetch = 0 : i64, scratch_operands = 0 : i64, tpu.core_type = #tpu.core_type<tc>} {
    %c0 = arith.constant 0 : index
    %c0_0 = arith.constant 0 : index
    %0 = vector.load %arg0[%c0, %c0_0] : memref<24x128xf32, #tpu.memory_space<vmem>>, vector<24x128xf32>
    %c0_1 = arith.constant 0 : index
    %c0_2 = arith.constant 0 : index
    %1 = vector.load %arg1[%c0_1, %c0_2] : memref<128x256xf32, #tpu.memory_space<vmem>>, vector<128x256xf32>
    %cst = arith.constant dense<0.000000e+00> : vector<24x256xf32>
    %2 = tpu.matmul %0, %1, %cst {dimension_numbers = #tpu.dot_dimension_numbers<[1], [0], [0], [1], [0, 0, 1, 1], [], []>} : vector<24x128xf32>, vector<128x256xf32>, vector<24x256xf32> -> vector<24x256xf32>
    %c0_3 = arith.constant 0 : index
    %c0_4 = arith.constant 0 : index
    %3 = vector.load %arg2[%c0_3, %c0_4] : memref<1x256xf32, #tpu.memory_space<vmem>>, vector<1x256xf32>
    %4 = vector.broadcast %3 : vector<1x256xf32> to vector<24x256xf32>
    %5 = arith.addf %2, %4 : vector<24x256xf32>
    %c0_5 = arith.constant 0 : index
    %c0_6 = arith.constant 0 : index
    %6 = vector.load %arg3[%c0_5, %c0_6] : memref<24x256xf32, #tpu.memory_space<vmem>>, vector<24x256xf32>
    tpu.vector_store %arg3[%c0_5, %c0_6], %5 {strides = array<i32>} : memref<24x256xf32, #tpu.memory_space<vmem>>, vector<24x256xf32>,
    return
  }
}

</mosaic_0001>

<bundles_post_ra>
// kernel: tpu_custom_call.1
= control target key start
LH: loop header
LB: loop body
LE: loop exit
PB: predicated region body
PF: predicated region fallthrough
CT: control target
= control target key end

     0   :  { %8 = vsyncpa [#allocation3], 0  ;;  %s367_s0 = inlined_call_operand.hbm [shape: f32[24,128], index: 0, kind: input, shape index: {}]   ;;  %s368_s1 = inlined_call_operand.hbm [shape: f32[128,256], index: 1, kind: input, shape index: {}]   ;;  %s369_s2 = inlined_call_operand.hbm [shape: f32[1,256], index: 2, kind: input, shape index: {}]   ;;  %s370_s3 = inlined_call_operand.hbm [shape: f32[24,256], index: 3, kind: output, shape index: {}]  }
   0x1   :  { %9 = vsyncpa [#allocation6], 0  ;;  %s28_s14 = sshll.u32 %s368_s1, 4  ;;  %s29_s14 = int_to_ptr.hbm [resolvable:$true] %s28_s14 }
   0x2   :  { %10 = vsyncpa [#allocation4], 0  ;;  %s321_s15 = smov [#allocation5]   ;;  %s15_s19 = sshll.u32 %s367_s0, 4  ;;  %s16_s19 = int_to_ptr.hbm [resolvable:$true] %s15_s19 }
   0x3   :  { %s30_s16 = sshll.u32 %s321_s15, 4  ;;  %s322_s20 = smov 256   ;;  %s31_s16 = int_to_ptr.vmem [resolvable:$true] %s30_s16 }
   0x4   :  { %s323_s21 = smov 16   ;;  %s324_s22 = smov [#allocation2]  }
   0x5   :  { %36 = dma.hbm_to_vmem [thread:$0]  %s29_s14, 4096, %s31_s16, [#allocation6], %s322_s20, %s322_s20, %s323_s21  }
   0x6   :  { %s17_s23 = sshll.u32 %s324_s22, 4  ;;  %s325_s1 = smov 128   ;;  %s18_s23 = int_to_ptr.vmem [resolvable:$true] %s17_s23 }
   0x7   :  { %s326_s24 = smov 8   ;;  %s42_s27 = sshll.u32 %s369_s2, 4  ;;  %s43_s27 = int_to_ptr.hbm [resolvable:$true] %s42_s27 }
   0x8   :  { %23 = dma.hbm_to_vmem [thread:$0]  %s16_s19, 384, %s18_s23, [#allocation3], %s325_s1, %s325_s1, %s326_s24  }
   0x9   :  { %s327_s28 = smov [#allocation7]  }
   0xa   :  { %s44_s0 = sshll.u32 %s327_s28, 4  ;;  %s45_s0 = int_to_ptr.vmem [resolvable:$true] %s44_s0 }
   0xb   :  { %47 = dma.hbm_to_vmem [thread:$0]  %s43_s27, 32, %s45_s0, [#allocation6]  }
   0xc   :  { %315 = dma.done.wait [#allocation3], 384  }
   0xd   :  { %316 = vsyncadd [#allocation3], 4294966912 }
   0xe   :  { %317 = dma.done.wait [#allocation6], 4128  }
   0xf   :  { %318 = vsyncadd [#allocation6], 4294963168  ;;  %v93_v0 = vld [vmem:[#allocation5 + $0xf0] sm:$0xff]  ;;  %v94_v1 = vld [vmem:[#allocation5 + $0xf8] sm:$0xff]  ;;  %s328_s2 = smov [#allocation8]   ;;  %s165_s5 = sshll.u32 %s370_s3, 4  ;;  %s166_s5 = int_to_ptr.hbm [resolvable:$true] %s165_s5 }
  0x10   :  { %v91_v2 = vld [vmem:[#allocation5 + $0xe0] sm:$0xff]  ;;  %179 = vmatpush.msra.mxu2 %v93_v0  ;;  %195 = vmatpush.msra.mxu3 %v94_v1  ;;  %v92_v3 = vld [vmem:[#allocation5 + $0xe8] sm:$0xff]  ;;  %v89_v4 = vld [vmem:[#allocation5 + $0xd0] sm:$0xff]  ;;  %s163_s29 = sshll.u32 %s328_s2, 4  ;;  %s164_s29 = int_to_ptr.vmem [resolvable:$true] %s163_s29 }
  0x11   :  { %v90_v5 = vld [vmem:[#allocation5 + $0xd8] sm:$0xff]  ;;  %101 = vmatpush.msra.mxu0 %v93_v0  ;;  %127 = vmatpush.msra.mxu1 %v94_v1  ;;  %v87_v6 = vld [vmem:[#allocation5 + $0xc0] sm:$0xff]  ;;  %v88_v7 = vld [vmem:[#allocation5 + $0xc8] sm:$0xff] }
  0x12   :  { %180 = vmatpush.msra.mxu2 %v91_v2  ;;  %196 = vmatpush.msra.mxu3 %v92_v3  ;;  %v85_v8 = vld [vmem:[#allocation5 + $0xb0] sm:$0xff]  ;;  %v86_v9 = vld [vmem:[#allocation5 + $0xb8] sm:$0xff]  ;;  %v83_v10 = vld [vmem:[#allocation5 + $0xa0] sm:$0xff] }
  0x13   :  { %102 = vmatpush.msra.mxu0 %v91_v2  ;;  %128 = vmatpush.msra.mxu1 %v92_v3  ;;  %v84_v11 = vld [vmem:[#allocation5 + $0xa8] sm:$0xff]  ;;  %v81_v12 = vld [vmem:[#allocation5 + $0x90] sm:$0xff]  ;;  %v82_v13 = vld [vmem:[#allocation5 + $0x98] sm:$0xff] }
  0x14   :  { %181 = vmatpush.msra.mxu2 %v89_v4  ;;  %197 = vmatpush.msra.mxu3 %v90_v5  ;;  %v79_v14 = vld [vmem:[#allocation5 + $0x80] sm:$0xff]  ;;  %v80_v15 = vld [vmem:[#allocation5 + $0x88] sm:$0xff]  ;;  %v77_v16 = vld [vmem:[#allocation5 + $0x70] sm:$0xff] }
  0x15   :  { %103 = vmatpush.msra.mxu0 %v89_v4  ;;  %129 = vmatpush.msra.mxu1 %v90_v5  ;;  %v78_v17 = vld [vmem:[#allocation5 + $0x78] sm:$0xff]  ;;  %v75_v18 = vld [vmem:[#allocation5 + $0x60] sm:$0xff]  ;;  %v76_v19 = vld [vmem:[#allocation5 + $0x68] sm:$0xff] }
  0x16   :  { %182 = vmatpush.msra.mxu2 %v87_v6  ;;  %198 = vmatpush.msra.mxu3 %v88_v7  ;;  %v73_v20 = vld [vmem:[#allocation5 + $0x50] sm:$0xff]  ;;  %v74_v21 = vld [vmem:[#allocation5 + $0x58] sm:$0xff]  ;;  %v71_v22 = vld [vmem:[#allocation5 + $0x40] sm:$0xff] }
  0x17   :  { %104 = vmatpush.msra.mxu0 %v87_v6  ;;  %130 = vmatpush.msra.mxu1 %v88_v7  ;;  %v72_v23 = vld [vmem:[#allocation5 + $0x48] sm:$0xff]  ;;  %v69_v24 = vld [vmem:[#allocation5 + $0x30] sm:$0xff]  ;;  %v70_v25 = vld [vmem:[#allocation5 + $0x38] sm:$0xff] }
  0x18   :  { %183 = vmatpush.msra.mxu2 %v85_v8  ;;  %199 = vmatpush.msra.mxu3 %v86_v9  ;;  %v67_v26 = vld [vmem:[#allocation5 + $0x20] sm:$0xff]  ;;  %v68_v27 = vld [vmem:[#allocation5 + $0x28] sm:$0xff]  ;;  %v65_v28 = vld [vmem:[#allocation5 + $0x10] sm:$0xff] }
  0x19   :  { %105 = vmatpush.msra.mxu0 %v85_v8  ;;  %131 = vmatpush.msra.mxu1 %v86_v9  ;;  %v66_v29 = vld [vmem:[#allocation5 + $0x18] sm:$0xff]  ;;  %v63_v30 = vld [vmem:[#allocation5] sm:$0xff]  ;;  %v64_v31 = vld [vmem:[#allocation5 + $0x8] sm:$0xff] }
  0x1a   :  { %184 = vmatpush.msra.mxu2 %v83_v10  ;;  %200 = vmatpush.msra.mxu3 %v84_v11  ;;  %v61_v32 = vld [vmem:[#allocation2 + $0x8] sm:$0xff]  ;;  %v60_v33 = vld [vmem:[#allocation2] sm:$0xff]  ;;  %v62_v34 = vld [vmem:[#allocation2 + $0x10] sm:$0xff] }
  0x1b   :  { %106 = vmatpush.msra.mxu0 %v83_v10  ;;  %132 = vmatpush.msra.mxu1 %v84_v11  ;;  %v95_v35 = vld [vmem:[#allocation7] sm:$0x3] }
  0x1c   :  { %185 = vmatpush.msra.mxu2 %v81_v12  ;;  %201 = vmatpush.msra.mxu3 %v82_v13  ;;  %v97_v36 = vperm.slane %v95_v35, 0  ;;  %v98_v37 = vperm.slane %v95_v35, 1 }
  0x1d   :  { %107 = vmatpush.msra.mxu0 %v81_v12  ;;  %133 = vmatpush.msra.mxu1 %v82_v13 }
  0x1e   :  { %186 = vmatpush.msra.mxu2 %v79_v14  ;;  %202 = vmatpush.msra.mxu3 %v80_v15 }
  0x1f   :  { %108 = vmatpush.msra.mxu0 %v79_v14  ;;  %134 = vmatpush.msra.mxu1 %v80_v15 }
  0x20   :  { %187 = vmatpush.msra.mxu2 %v77_v16  ;;  %203 = vmatpush.msra.mxu3 %v78_v17 }
  0x21   :  { %109 = vmatpush.msra.mxu0 %v77_v16  ;;  %135 = vmatpush.msra.mxu1 %v78_v17 }
  0x22   :  { %188 = vmatpush.msra.mxu2 %v75_v18  ;;  %204 = vmatpush.msra.mxu3 %v76_v19 }
  0x23   :  { %110 = vmatpush.msra.mxu0 %v75_v18  ;;  %136 = vmatpush.msra.mxu1 %v76_v19 }
  0x24   :  { %189 = vmatpush.msra.mxu2 %v73_v20  ;;  %205 = vmatpush.msra.mxu3 %v74_v21 }
  0x25   :  { %111 = vmatpush.msra.mxu0 %v73_v20  ;;  %137 = vmatpush.msra.mxu1 %v74_v21 }
  0x26   :  { %190 = vmatpush.msra.mxu2 %v71_v22  ;;  %206 = vmatpush.msra.mxu3 %v72_v23 }
  0x27   :  { %112 = vmatpush.msra.mxu0 %v71_v22  ;;  %138 = vmatpush.msra.mxu1 %v72_v23 }
  0x28   :  { %191 = vmatpush.msra.mxu2 %v69_v24  ;;  %207 = vmatpush.msra.mxu3 %v70_v25 }
  0x29   :  { %113 = vmatpush.msra.mxu0 %v69_v24  ;;  %139 = vmatpush.msra.mxu1 %v70_v25 }
  0x2a   :  { %192 = vmatpush.msra.mxu2 %v67_v26  ;;  %208 = vmatpush.msra.mxu3 %v68_v27 }
  0x2b   :  { %114 = vmatpush.msra.mxu0 %v67_v26  ;;  %140 = vmatpush.msra.mxu1 %v68_v27 }
  0x2c   :  { %193 = vmatpush.msra.mxu2 %v65_v28  ;;  %209 = vmatpush.msra.mxu3 %v66_v29 }
  0x2d   :  { %115 = vmatpush.msra.mxu0 %v65_v28  ;;  %141 = vmatpush.msra.mxu1 %v66_v29 }
  0x2e   :  { %194 = vmatpush.msra.mxu2 %v63_v30  ;;  %210 = vmatpush.msra.mxu3 %v64_v31 }
  0x2f   :  { %120 = vmatmul.f32.vlgmr.msra.gmra.mxu2 %v61_v32  ;;  %146 = vmatmul.f32.vlgmr.msra.gmra.mxu3 %v61_v32 }
  0x30   :  { %116 = vmatpush.msra.mxu0 %v63_v30  ;;  %142 = vmatpush.msra.mxu1 %v64_v31 }
  0x31   :  { %117 = vmatmul.f32.vlgmr.msra.gmra.mxu0 %v60_v33  ;;  %143 = vmatmul.f32.vlgmr.msra.gmra.mxu1 %v60_v33 }
  0x37   :  { %123 = vmatmul.f32.gmra.mxu2 %v62_v34  ;;  %149 = vmatmul.f32.gmra.mxu3 %v62_v34 }
  0xae   :  { %v118_v38 = vpop.f32.mrf.mxu0  ;;  %v144_v39 = vpop.f32.mrf.mxu1 }
  0xaf   :  { %v119_v40 = vadd.f32 %v118_v38, %v97_v36  ;;  %v145_v41 = vadd.f32 %v144_v39, %v98_v37 }
  0xb1   :  { %153 = vst [vmem:[#allocation8] sm:$0xff] %v119_v40 }
  0xb2   :  { %v121_v42 = vpop.f32.mrf.mxu2  ;;  %v147_v43 = vpop.f32.mrf.mxu3  ;;  %154 = vst [vmem:[#allocation8 + $0x8] sm:$0xff] %v145_v41 }
  0xb3   :  { %v122_v44 = vadd.f32 %v121_v42, %v97_v36  ;;  %v148_v45 = vadd.f32 %v147_v43, %v98_v37 }
  0xb5   :  { %155 = vst [vmem:[#allocation8 + $0x10] sm:$0xff] %v122_v44 }
  0xb6   :  { %156 = vst [vmem:[#allocation8 + $0x18] sm:$0xff] %v148_v45 }
  0xba   :  { %v124_v46 = vpop.f32.mrf.mxu2  ;;  %v150_v47 = vpop.f32.mrf.mxu3 }
  0xbb   :  { %v125_v48 = vadd.f32 %v124_v46, %v97_v36  ;;  %v151_v49 = vadd.f32 %v150_v47, %v98_v37 }
  0xbd   :  { %157 = vst [vmem:[#allocation8 + $0x20] sm:$0xff] %v125_v48 }
  0xbe   :  { %158 = vst [vmem:[#allocation8 + $0x28] sm:$0xff] %v151_v49 }
  0xbf   :  { %171 = dma.vmem_to_hbm [thread:$0]  %s164_s29, 768, %s166_s5, [#allocation4], %s322_s20, %s322_s20, %s323_s21  }
  0xc0   :  { %319 = dma.done.wait [#allocation4], 768  }
  0xc1   :  { %320 = vsyncadd [#allocation4], 4294966528 }
  0xc2   :  { %176 = vsyncpa [#allocation3], 1 }
  0xc3   :  { %177 = vsyncpa [#allocation6], 1 }
  0xc4   :  { %178 = vsyncpa [#allocation4], 1 }

</bundles_post_ra>
